<compile_context>
chip_gen: v7x
topology: tpu7x:2x2x1
jax: 0.10.0
libtpu: 0.0.40
codegen_flags: <defaults>
</compile_context>

<pallas_src>
import jax
import jax.numpy as jnp
from jax.experimental import pallas as pl
from jax.experimental.pallas import tpu as pltpu


def _object_tagger_kernel(
    hidden_ref,  # VMEM (1, tS, H)   bf16
    w_ref,       # VMEM (H, Rp)      bf16   fused [w_start | w_end | pad]
    bias_ref,    # VMEM (1, 1, Rp)   f32    per-batch fused bias (v_sub @ W + b)
    out_ref,     # VMEM (1, tS, Rp)  f32    sigmoid([start | end | pad])
):
    # One MXU matmul over the sequence tile; f32 accumulate.
    logits = jnp.dot(
        hidden_ref[0], w_ref[...], preferred_element_type=jnp.float32
    )  # (tS, Rp)
    logits = logits + bias_ref[0]  # (1, Rp) broadcasts over rows
    out_ref[0] = jax.nn.sigmoid(logits).astype(out_ref.dtype)


def _pick_seq_tile(S, H, Rp, budget_bytes=12 << 20):
    """Largest sequence tile (multiple of 8, dividing S) whose double-buffered
    hidden(bf16) + output(f32) tiles fit the VMEM budget."""
    per_row = 2 * (H * 2 + Rp * 4)  # double-buffered bf16 hidden row + f32 out row
    max_rows = max(budget_bytes // per_row, 8)
    if S <= max_rows:
        return S
    t = (max_rows // 8) * 8
    while t >= 8:
        if S % t == 0:
            return t
        t -= 8
    return S  # fallback: no tiling (S not factorable into multiples of 8)


def object_tagger_forward(hidden, batch_start_idx, batch_end_idx,
                          w_start, b_start, w_end, b_end):
    """hidden: (B, S, H) f32; idx: (B,) int; w_*: (H, R); b_*: (R,)."""
    B, S, H = hidden.shape
    R = w_start.shape[1]

    # Fuse both heads and pad the lane dimension to a multiple of 128 so the MXU
    # columns and the output stores are lane-dense (one padded Rp, not 2 x per-head).
    two_r = 2 * R
    Rp = ((two_r + 127) // 128) * 128

    w_cat = jnp.concatenate([w_start, w_end], axis=1)          # (H, 2R) f32
    b_cat = jnp.concatenate([b_start, b_end], axis=0)          # (2R,)   f32
    if Rp > two_r:
        w_cat = jnp.pad(w_cat, ((0, 0), (0, Rp - two_r)))
        b_cat = jnp.pad(b_cat, (0, Rp - two_r))

    # Subject gather + bias fold in the wrapper (plain XLA, tiny).  Note: clamping
    # defines out-of-range index behavior; the in-range path matches PyTorch exactly.
    si = jnp.clip(batch_start_idx.astype(jnp.int32), 0, S - 1)
    ei = jnp.clip(batch_end_idx.astype(jnp.int32), 0, S - 1)
    bidx = jnp.arange(B)
    v_sub = (hidden[bidx, si] + hidden[bidx, ei]) * 0.5        # (B, H)  f32
    fused_bias = (v_sub @ w_cat + b_cat).reshape(B, 1, Rp)     # (B,1,Rp) f32

    # bf16 matmul operands (f32 accumulate inside the kernel).
    hidden_bf16 = hidden.astype(jnp.bfloat16)
    w_bf16 = w_cat.astype(jnp.bfloat16)

    tS = _pick_seq_tile(S, H, Rp)
    grid = (B, S // tS)

    grid_spec = pltpu.PrefetchScalarGridSpec(
        num_scalar_prefetch=0,
        grid=grid,
        in_specs=[
            pl.BlockSpec((1, tS, H), lambda b, s: (b, s, 0)),   # hidden tile
            pl.BlockSpec((H, Rp), lambda b, s: (0, 0)),         # fused weights (const)
            pl.BlockSpec((1, 1, Rp), lambda b, s: (b, 0, 0)),   # per-batch fused bias
        ],
        out_specs=pl.BlockSpec((1, tS, Rp), lambda b, s: (b, s, 0)),
    )

    fused_out = pl.pallas_call(
        _object_tagger_kernel,
        grid_spec=grid_spec,
        out_shape=jax.ShapeDtypeStruct((B, S, Rp), jnp.float32),
        compiler_params=pltpu.CompilerParams(
            dimension_semantics=("parallel", "parallel"),
            vmem_limit_bytes=32 << 20,  # safe on v5e/v6e/v7x; tiles sized for 16 MiB
        ),
    )(hidden_bf16, w_bf16, fused_bias)

    start_ptr = fused_out[..., :R]
    end_ptr = fused_out[..., R:two_r]
    return start_ptr, end_ptr


def _reference(hidden, batch_start_idx, batch_end_idx, w_start, b_start, w_end, b_end):
    B = hidden.shape[0]
    bidx = jnp.arange(B)
    sub_start = hidden[bidx, batch_start_idx]
    sub_end = hidden[bidx, batch_end_idx]
    v_sub = (sub_start + sub_end) / 2.0
    h = hidden + v_sub[:, None, :]
    s = jax.nn.sigmoid(h @ w_start + b_start)
    e = jax.nn.sigmoid(h @ w_end + b_end)
    return s, e


if __name__ == "__main__":
    # Small shapes consistent with the module's forward pass.
    B, S, H, R = 2, 8, 32, 4  # batch, seq_len, hidden_size, rela_num

    key = jax.random.PRNGKey(0)
    k_h, k_ws, k_bs, k_we, k_be, k_si, k_ei = jax.random.split(key, 7)

    hidden = jax.random.normal(k_h, (B, S, H), dtype=jnp.float32)
    # nn.Linear(hidden_size, rela_num) x2, stored transposed as (H, R).
    w_start = jax.random.normal(k_ws, (H, R), dtype=jnp.float32) * 0.1
    b_start = jax.random.normal(k_bs, (R,), dtype=jnp.float32) * 0.1
    w_end = jax.random.normal(k_we, (H, R), dtype=jnp.float32) * 0.1
    b_end = jax.random.normal(k_be, (R,), dtype=jnp.float32) * 0.1

    batch_start_idx = jax.random.randint(k_si, (B,), 0, S, dtype=jnp.int32)
    batch_end_idx = jax.random.randint(k_ei, (B,), 0, S, dtype=jnp.int32)

    start_ptr, end_ptr = object_tagger_forward(
        hidden, batch_start_idx, batch_end_idx, w_start, b_start, w_end, b_end
    )
    jax.block_until_ready((start_ptr, end_ptr))

    ref_s, ref_e = _reference(
        hidden, batch_start_idx, batch_end_idx, w_start, b_start, w_end, b_end
    )
    assert start_ptr.shape == (B, S, R) and end_ptr.shape == (B, S, R)
    # Tolerance loosened for the bf16 matmul path (f32 accumulate).
    assert jnp.allclose(start_ptr, ref_s, atol=2e-2), "start pointer mismatch"
    assert jnp.allclose(end_ptr, ref_e, atol=2e-2), "end pointer mismatch"

    print("KERNEL_OK")
</pallas_src>

<mosaic_0001>
module attributes {stable_mosaic.version = 11 : i64} {
  func.func @_object_tagger_kernel(%arg0: i32, %arg1: i32, %arg2: memref<1x8x32xbf16, #tpu.memory_space<vmem>>, %arg3: memref<32x128xbf16, #tpu.memory_space<vmem>>, %arg4: memref<1x1x128xf32, #tpu.memory_space<vmem>>, %arg5: memref<1x8x128xf32, #tpu.memory_space<vmem>>) attributes {dimension_semantics = [#tpu.dimension_semantics<parallel>, #tpu.dimension_semantics<parallel>], iteration_bounds = array<i64: 2, 1>, scalar_prefetch = 0 : i64, scratch_operands = 0 : i64, tpu.core_type = #tpu.core_type<tc>, window_params = [{transform_indices = @transform_0, window_bounds = array<i64: 1, 8, 32>}, {pipeline_mode = #tpu.pipeline_mode<synchronous>, transform_indices = @transform_1, window_bounds = array<i64: 32, 128>}, {transform_indices = @transform_2, window_bounds = array<i64: 1, 1, 128>}, {transform_indices = @transform_3, window_bounds = array<i64: 1, 8, 128>}]} {
    %c0 = arith.constant 0 : index
    %c0_0 = arith.constant 0 : index
    %c0_1 = arith.constant 0 : index
    %0 = vector.load %arg2[%c0, %c0_0, %c0_1] : memref<1x8x32xbf16, #tpu.memory_space<vmem>>, vector<1x8x32xbf16>
    %1 = vector.shape_cast %0 : vector<1x8x32xbf16> to vector<8x32xbf16>
    %c0_2 = arith.constant 0 : index
    %c0_3 = arith.constant 0 : index
    %2 = vector.load %arg3[%c0_2, %c0_3] : memref<32x128xbf16, #tpu.memory_space<vmem>>, vector<32x128xbf16>
    %cst = arith.constant dense<0.000000e+00> : vector<8x128xf32>
    %3 = tpu.matmul %1, %2, %cst {dimension_numbers = #tpu.dot_dimension_numbers<[1], [0], [0], [1], [0, 0, 1, 1], [], []>} : vector<8x32xbf16>, vector<32x128xbf16>, vector<8x128xf32> -> vector<8x128xf32>
    %c0_4 = arith.constant 0 : index
    %c0_5 = arith.constant 0 : index
    %c0_6 = arith.constant 0 : index
    %4 = vector.load %arg4[%c0_4, %c0_5, %c0_6] : memref<1x1x128xf32, #tpu.memory_space<vmem>>, vector<1x1x128xf32>
    %5 = vector.shape_cast %4 : vector<1x1x128xf32> to vector<1x128xf32>
    %6 = vector.broadcast %5 : vector<1x128xf32> to vector<8x128xf32>
    %7 = arith.addf %3, %6 : vector<8x128xf32>
    %8 = arith.negf %7 : vector<8x128xf32>
    %9 = math.exp %8 : vector<8x128xf32>
    %cst_7 = arith.constant 1.000000e+00 : f32
    %10 = vector.broadcast %cst_7 : f32 to vector<8x128xf32>
    %11 = arith.addf %10, %9 : vector<8x128xf32>
    %12 = arith.divf %10, %11 : vector<8x128xf32>
    %c0_8 = arith.constant 0 : index
    %c0_9 = arith.constant 0 : index
    %c0_10 = arith.constant 0 : index
    %13 = vector.load %arg5[%c0_8, %c0_9, %c0_10] : memref<1x8x128xf32, #tpu.memory_space<vmem>>, vector<1x8x128xf32>
    %14 = vector.shape_cast %13 : vector<1x8x128xf32> to vector<8x128xf32>
    %15 = vector.shape_cast %12 : vector<8x128xf32> to vector<1x8x128xf32>
    tpu.vector_store %arg5[%c0_8, %c0_9, %c0_10], %15 {strides = array<i32>} : memref<1x8x128xf32, #tpu.memory_space<vmem>>, vector<1x8x128xf32>,
    return
  }
  func.func @transform_0(%arg0: i32, %arg1: i32) -> (i32, i32, i32) {
    %c0_i32 = arith.constant 0 : i32
    %c0_i32_0 = arith.constant 0 : i32
    return %arg0, %arg1, %c0_i32 : i32, i32, i32
  }
  func.func @transform_1(%arg0: i32, %arg1: i32) -> (i32, i32) {
    %c0_i32 = arith.constant 0 : i32
    %c0_i32_0 = arith.constant 0 : i32
    %c0_i32_1 = arith.constant 0 : i32
    return %c0_i32, %c0_i32_0 : i32, i32
  }
  func.func @transform_2(%arg0: i32, %arg1: i32) -> (i32, i32, i32) {
    %c0_i32 = arith.constant 0 : i32
    %c0_i32_0 = arith.constant 0 : i32
    %c0_i32_1 = arith.constant 0 : i32
    return %arg0, %c0_i32, %c0_i32_0 : i32, i32, i32
  }
  func.func @transform_3(%arg0: i32, %arg1: i32) -> (i32, i32, i32) {
    %c0_i32 = arith.constant 0 : i32
    %c0_i32_0 = arith.constant 0 : i32
    return %arg0, %arg1, %c0_i32 : i32, i32, i32
  }
}

</mosaic_0001>

<bundles_post_ra>
// kernel: tpu_custom_call.1
= control target key start
LH: loop header
LB: loop body
LE: loop exit
PB: predicated region body
PF: predicated region fallthrough
CT: control target
= control target key end

     0   :  { %8 = vsyncpa [#allocation3], 0  ;;  %s929_s0 = inlined_call_operand.hbm [shape: bf16[2,8,32], index: 0, kind: input, shape index: {}]   ;;  %s930_s1 = inlined_call_operand.hbm [shape: bf16[32,128], index: 1, kind: input, shape index: {}]   ;;  %s931_s2 = inlined_call_operand.vmem [shape: f32[2,1,128], index: 2, kind: input, shape index: {}]   ;;  %s932_s3 = inlined_call_operand.hbm [shape: f32[2,8,128], index: 3, kind: output, shape index: {}]  }
   0x1   :  { %10 = vsyncpa [#allocation3 + $0x1], 0 }
   0x2   :  { %11 = vsyncpa [#allocation6], 0 }
   0x3   :  { %12 = vsyncpa [#allocation4], 0 }
   0x4   :  { %14 = vsyncpa [#allocation4 + $0x1], 0  ;;  %s709_s12 = smov 0   ;;  %s711_s13 = smov 0  }
   0x5   :  { %s713_s14 = smov 0   ;;  %s715_s15 = smov 0  }
   0x6   :  { %s717_s16 = smov 0   ;;  %s719_s17 = smov 0  }
   0x7 LB: > { %s422_s18 = sadd.s32 4294967295, %s680_s17   ;;  %s423_s19 = sadd.s32 4294967294, %s680_s17   ;;  %s680_s17 = sphi %s719_s17, %s20_s17   ;;  %s676_s16 = sphi %s717_s16, %s956_s16   ;;  %s672_s15 = sphi %s715_s15, %s955_s15   ;;  %s668_s14 = sphi %s713_s14, %s954_s14   ;;  %s664_s13 = sphi %s711_s13, %s953_s13   ;;  %s660_s12 = sphi %s709_s12, %s952_s12  }
   0x8   : > { %p54_p0 = scmp.ne.s32.totalorder %s664_s13, %s660_s12  ;;  %p743_p1 = scmp.eq.s32.totalorder %s422_s18, 0 }
   0x9   : > { %p747_p2 = scmp.eq.s32.totalorder %s422_s18, 1  ;;  %p133_p3 = scmp.eq.s32.totalorder %s423_s19, 1 }
   0xa   : > { %s937_s20 = scalar_select %p743_p1, 1, 0 }
   0xb   : > { %s938_s21 = scalar_select %p747_p2, 1, 0 }
   0xc   : > { %p753_p4 = por %p743_p1, %p54_p0  ;;  %p424_p5 = scmp.ge.s32.totalorder %s680_s17, 1 }
   0xd   : > { %p758_p6 = por %p133_p3, %p54_p0  ;;  %p140_p7 = scmp.lt.s32.totalorder %s680_s17, 3 }
   0xe   : > { %s939_s22 = scalar_select %p753_p4, 1, 0 }
   0xf   : > { %s940_s23 = scalar_select %p758_p6, 1, 0 }
  0x10   : > { %p763_p8 = pnand %p424_p5, %p140_p7  ;;  %s682_s25 = smov [#allocation5]  }
  0x11   : > { %s152_s26 = sshll.u32 %s682_s25, 4  ;;  %s32_s28 = sadd.s32 1, %s676_s16  ;;  %s153_s26 = int_to_ptr.vmem [resolvable:$true] %s152_s26 }
  0x12   : > { %s941_s24 = scalar_select %p763_p8, 1, 0 }
  0x13   : > { %p461_p9 = pneg %p763_p8  ;;  %s536_s4 = scalar_lea.hbm %s930_s1, 256 }
  0x14   : > { %p537_p12 = scmp.ne.s32.totalorder %s930_s1, %s536_s4  ;;  %p543_p5 = scmp.lt.u32.totalorder %s536_s4, %s930_s1 }
  0x15   : > { %p772_p11 = pnand %p461_p9, %p743_p1 }
  0x17   : > { %p538_p13 = pneg %p772_p11 }
  0x19   : > { %p539_p0 = pnand %p538_p13, %p537_p12 }
  0x1b   : > { %p540_p3 = pneg %p539_p0 }
  0x1d   : > { %p545_p7 = pnand %p543_p5, %p540_p3 }
  0x1f   : > { %548 = shalt.err (!%p545_p7)
}
  0x20   : > { %s549_s9 = scalar_lea.vmem %s153_s26, 256  ;;  %p557_p1 = scmp.lt.s32.totalorder %s153_s26, %s153_s26 }
  0x21   : > { %p550_p9 = scmp.ne.s32.totalorder %s153_s26, %s549_s9  ;;  %p558_p4 = scmp.lt.s32.totalorder %s549_s9, %s549_s9 }
  0x23   : > { %p552_p10 = pnand %p550_p9, %p538_p13  ;;  %p559_p8 = por %p558_p4, %p557_p1 }
  0x25   : > { %p553_p6 = pneg %p552_p10 }
  0x27   : > { %p560_p2 = pnand %p559_p8, %p553_p6 }
  0x29   : > { %563 = shalt.err (!%p560_p2)
}
  0x2a   : > { %s683_s10 = smov 64   ;;  %s684_s11 = smov 4  }
  0x2b   : > { %464 = dma.hbm_to_vmem [thread:$0]  (!%p772_p11), %s930_s1, 256, %s153_s26, [#allocation6], %s683_s10, %s683_s10, %s684_s11  }
  0x2c   : > { %p34_p1 = scmp.ge.s32.totalorder %s32_s28, 2  ;;  %s41_s25 = sadd.s32 1, %s668_s14 }
  0x2d   : > { %p48_p2 = scmp.ne.s32.totalorder %s668_s14, %s664_s13  ;;  %p49_p4 = scmp.eq.s32.totalorder %s680_s17, 0 }
  0x2e   : > { %s958_s28 = smov (%p34_p1, %s32_s28), 0  ;;  %p944_p8 = scmp.ne.s32.totalorder %s938_s21, 0 }
  0x2f   : > { %p799_p6 = por %p49_p4, %p48_p2  ;;  %s36_s27 = ssub.s32 %s676_s16, %s958_s28 }
  0x30   : > { %p805_p10 = por %p944_p8, %p48_p2  ;;  %p474_p12 = scmp.lt.s32.totalorder %s680_s17, 2 }
  0x31   : > { %p39_p11 = scmp.eq.s32.totalorder %s36_s27, 0  ;;  %s166_s26 = sand.u32 1, %s668_s14  }
  0x32   : > { %s427_s4 = sshll.u32 %s166_s26, 2  ;;  %s428_s6 = sshll.u32 %s676_s16, 6 }
  0x33   : > { %s814_s5 = scalar_select %p39_p11, %s668_s14, %s41_s25  }
  0x34   : > { %s820_s9 = scalar_lea.hbm %s929_s0, %s428_s6  ;;  %s170_s21 = scalar_lea.vmem [#allocation2], %s427_s4 }
  0x35   : > { %s178_s10 = sshll.u32 %s170_s21, 4  ;;  %p826_p13 = pnand %p474_p12, %p799_p6  ;;  %s822_s10 = int_to_ptr.vmem [resolvable:$true] %s178_s10 }
  0x36   : > { %s167_s18 = scalar_lea.sflag [#allocation3], %s166_s26  ;;  %s564_s19 = scalar_lea.hbm %s820_s9, 64 }
  0x37   : > { %p565_p0 = scmp.ne.s32.totalorder %s820_s9, %s564_s19  ;;  %p566_p3 = pneg %p826_p13 }
  0x38   : > { %s569_s4 = scalar_lea.hbm %s929_s0, 128  ;;  %p570_p9 = scmp.lt.u32.totalorder %s820_s9, %s929_s0 }
  0x39   : > { %p567_p5 = pnand %p566_p3, %p565_p0  ;;  %p571_p1 = scmp.lt.u32.totalorder %s569_s4, %s564_s19 }
  0x3a   : > { %p573_p4 = scmp.lt.u32.totalorder %s564_s19, %s820_s9 }
  0x3b   : > { %p568_p7 = pneg %p567_p5  ;;  %p572_p2 = por %p571_p1, %p570_p9 }
  0x3d   : > { %p574_p6 = por %p573_p4, %p572_p2 }
  0x3f   : > { %p575_p8 = pnand %p574_p6, %p568_p7 }
  0x41   : > { %578 = shalt.err (!%p575_p8)
}
  0x42   : > { %s579_s26 = scalar_lea.vmem %s822_s10, 64  ;;  %s685_s7 = smov [#allocation2]  }
  0x43   : > { %p580_p12 = scmp.ne.s32.totalorder %s822_s10, %s579_s26  ;;  %s584_s8 = sshll.u32 %s685_s7, 4  ;;  %s585_s8 = int_to_ptr.vmem [resolvable:$false] %s584_s8 }
  0x44   : > { %s586_s21 = scalar_lea.vmem %s585_s8, 128  ;;  %p587_p5 = scmp.lt.s32.totalorder %s822_s10, %s585_s8 }
  0x45   : > { %p582_p11 = pnand %p580_p12, %p566_p3  ;;  %p588_p9 = scmp.lt.s32.totalorder %s586_s21, %s579_s26 }
  0x47   : > { %p583_p0 = pneg %p582_p11  ;;  %p589_p1 = por %p588_p9, %p587_p5 }
  0x49   : > { %p590_p2 = pnand %p589_p1, %p583_p0 }
  0x4b   : > { %593 = shalt.err (!%p590_p2)
}
  0x4c   : > { %468 = dma.hbm_to_vmem [thread:$0]  (!%p826_p13), %s820_s9, 64, %s822_s10, %s167_s18  }
  0x4d   : > { %p947_p7 = scmp.ne.s32.totalorder %s941_s24, 0 }
  0x4e   : > { %s858_s19 = sand.u32 (!%p947_p7), 1, %s664_s13   ;;  %p948_p3 = scmp.ne.s32.totalorder (!%p947_p7), %s939_s22, 0 }
  0x4f   : > { %193 = sbr.rel (%p947_p7) target bundleno = 353 (0x161), region = 32  ;;  %s430_s25 = sshll.u32 (!%p947_p7), %s858_s19, 2 }
  0x50   : > { %s196_s27 = scalar_lea.sflag (!%p947_p7), [#allocation3], %s858_s19  ;;  %s199_s4 = scalar_lea.vmem (!%p947_p7), [#allocation2], %s430_s25 }
  0x56   : > { %647 = dma.done.wait (%p948_p3), %s196_s27, 64  }
  0x57   : > { %649 = vsyncadd (%p948_p3), %s196_s27, 4294967232  ;;  %p949_p4 = scmp.ne.s32.totalorder %s937_s20, 0 }
  0x59   : > { %651 = dma.done.wait (%p949_p4), [#allocation6], 256  }
  0x5a   : > { %653 = vsyncadd (%p949_p4), [#allocation6], 4294967040  ;;  %v686_v0 = vmov 0.0   ;;  %vm687_vm0 = vmmov 0   ;;  %v530_v1 = vld [vmem:[#allocation5] sm:$0xff]   ;;  %v531_v2 = vld [vmem:[#allocation5 + $0x8] sm:$0xff]  }
  0x5b   : > { %445 = vmatprep.subr.bf16.mxu0 %v686_v0  ;;  %449 = vmatprep.mubr.msk.bf16.mxu0 %vm687_vm0, %v686_v0  ;;  %v233_v3 = vld [vmem:[%s199_s4] sm:$0xf]  ;;  %vm257_vm1 = vcmask 261120   ;;  %p229_p13 = scmp.lt.s32.totalorder %s672_s15, 1  ;;  %s432_s10 = sshll.u32 %s858_s19, 3 }
  0x5c   : > { %446 = vmatpush3.bf16.msra.mxu0 %v530_v1  ;;  %s439_s11 = sshll.u32 %s672_s15, 7  ;;  %s228_s18 = scalar_lea.vmem [#allocation7], %s432_s10 }
  0x5d   : > { %447 = vmatprep.subr.bf16.mxu0 %v686_v0  ;;  %s230_s22 = scalar_select %p229_p13, %s672_s15, 1 }
  0x5e   : > { %s323_s29 = sshll.u32 %s228_s18, 4  ;;  %s880_s7 = scalar_lea.hbm %s932_s3, %s439_s11  ;;  %s882_s29 = int_to_ptr.vmem [resolvable:$true] %s323_s29 }
  0x5f   : > { %s231_s9 = scalar_lea.vmem %s931_s2, %s230_s22  ;;  %s309_s8 = scalar_lea.sflag [#allocation4], %s858_s19 }
  0x60   : > { %448 = vmatpush3.bf16.msra.mxu0 %v531_v2  ;;  %v433_v4 = vld [vmem:[%s231_s9] ss:$0 sm:$0xff]  ;;  %s594_s21 = scalar_lea.vmem %s882_s29, 128  ;;  %s688_s15 = smov [#allocation7]  }
  0x61   : > { %p595_p6 = scmp.ne.s32.totalorder %s882_s29, %s594_s21  ;;  %s598_s25 = sshll.u32 %s688_s15, 4  ;;  %s599_s25 = int_to_ptr.vmem [resolvable:$false] %s598_s25 }
  0x62   : > { %s600_s27 = scalar_lea.vmem %s599_s25, 256  ;;  %p601_p11 = scmp.lt.s32.totalorder %s882_s29, %s599_s25 }
  0x63   : > { %450 = vmatmul.mubr.msk.bf16.vlgmr.msra.gmra.mrb[0].mxu0 %vm257_vm1, %v233_v3  ;;  %p596_p8 = pnand %p595_p6, %p805_p10  ;;  %p602_p0 = scmp.lt.s32.totalorder %s600_s27, %s594_s21 }
  0x65   : > { %p597_p12 = pneg %p596_p8  ;;  %p603_p5 = por %p602_p0, %p601_p11 }
  0x67   : > { %p604_p9 = pnand %p603_p5, %p597_p12 }
 0x136   : > { %v295_v5 = vpop.f32.mrb[0].mxu0 }
 0x137   : > { %v296_v6 = vadd.f32 %v433_v4, %v295_v5  ;;  %v451_v7 = vpop.f32.mrb[1].mxu0 }
 0x138   : > { %v298_v8 = vpop.f32.mrb[2].mxu0 }
 0x139   : > { %v437_v9 = vmul.f32 -1.442695, %v296_v6  ;;  %v452_v10 = vpop.f32.mrb[3].mxu0 }
 0x13b   : > { %532 = vpow2.f32 %v437_v9 }
 0x145   : > { %v533_v11 = vpop.eup %532 }
 0x146   : > { %v304_v12 = vadd.f32 1.0, %v533_v11 }
 0x148   : > { %534 = vrcp.f32 %v304_v12 }
 0x152   : > { %v535_v13 = vpop.eup %534 }
 0x153   : > { %307 = vst [vmem:[%s228_s18] sm:$0xff] %v535_v13 }
 0x154   : > { %607 = shalt.err (!%p604_p9)
}
 0x155   : > { %s608_s19 = scalar_lea.hbm %s880_s7, 128  ;;  %s612_s20 = scalar_lea.hbm %s932_s3, 256 }
 0x156   : > { %p609_p1 = scmp.ne.s32.totalorder %s880_s7, %s608_s19  ;;  %p613_p3 = scmp.lt.u32.totalorder %s880_s7, %s932_s3 }
 0x157   : > { %p614_p4 = scmp.lt.u32.totalorder %s612_s20, %s608_s19  ;;  %p616_p6 = scmp.lt.u32.totalorder %s608_s19, %s880_s7 }
 0x158   : > { %p610_p2 = pnand %p609_p1, %p805_p10 }
 0x159   : > { %p615_p13 = por %p614_p4, %p613_p3 }
 0x15a   : > { %p611_p7 = pneg %p610_p2 }
 0x15b   : > { %p617_p8 = por %p616_p6, %p615_p13 }
 0x15d   : > { %p618_p12 = pnand %p617_p8, %p611_p7 }
 0x15f   : > { %621 = shalt.err (!%p618_p12)
}
 0x160   : > { %459 = dma.vmem_to_hbm [thread:$0]  (%p805_p10), %s882_s29, 128, %s880_s7, %s309_s8  }
 0x161 PF: > { %s335_s10 = sand.u32 1, %s660_s12   ;;  %p950_p11 = scmp.ne.s32.totalorder %s940_s23, 0 }
 0x162   : > { %p951_p0 = scmp.ge.s32.totalorder %s680_s17, 2  ;;  %s336_s11 = scalar_lea.sflag [#allocation4], %s335_s10 }
 0x164   : > { %p470_p5 = pnand %p951_p0, %p950_p11 }
 0x166   : > { %655 = dma.done.wait (!%p470_p5), %s336_s11, 128  }
 0x167   : > { %657 = vsyncadd (!%p470_p5), %s336_s11, 4294967168  ;;  %s20_s17 = sadd.s32 1, %s680_s17   ;;  %s952_s12 = smov %s664_s13 }
 0x168   : > { %p17_p9 = scmp.ge.s32.totalorder %s20_s17, 4   ;;  %s953_s13 = smov %s668_s14 }
 0x169   : > { %s954_s14 = smov %s814_s5  ;;  %s955_s15 = smov %s676_s16 }
 0x16a   : > { %s956_s16 = smov %s958_s28  ;;  %19 = sbr.rel (!%p17_p9) target bundleno = 7 (0x7), region = 84 }
 0x171   :  { %341 = vsyncpa [#allocation3], 1 }
 0x172   :  { %343 = vsyncpa [#allocation3 + $0x1], 1 }
 0x173   :  { %344 = vsyncpa [#allocation6], 1 }
 0x174   :  { %345 = vsyncpa [#allocation4], 1 }
 0x175   :  { %347 = vsyncpa [#allocation4 + $0x1], 1 }

</bundles_post_ra>
